<compile_context>
chip_gen: v7x
topology: tpu7x:2x2x1
jax: 0.10.0
libtpu: 0.0.40
codegen_flags: <defaults>
</compile_context>

<pallas_src>
import jax
import jax.numpy as jnp
from jax.experimental import pallas as pl
from jax.experimental.pallas import tpu as pltpu


def _round_up(x, m):
    return pl.cdiv(x, m) * m


def segate_kernel(xv_ref, xt_ref, wv_ref, wt_ref, bp_ref, wg_ref, out_ref):
    # One row-tile of the batch per grid step; weights are VMEM-resident.
    # activation = x_v @ Wv + x_t @ Wt + b   (== project(concat(x_list)))
    act = (jnp.dot(xv_ref[...], wv_ref[...], preferred_element_type=jnp.float32)
           + jnp.dot(xt_ref[...], wt_ref[...], preferred_element_type=jnp.float32)
           + bp_ref[...])
    # dropout: identity (inference)
    # gate = sigmoid(act @ W_gate), W_gate = (W2 @ W1)^T precomputed on host.
    gate = jax.nn.sigmoid(
        jnp.dot(act.astype(wg_ref.dtype), wg_ref[...],
                preferred_element_type=jnp.float32))
    out_ref[...] = (gate * act).astype(out_ref.dtype)


def prepare_params(wp, bp, w1, w2, vlad_size):
    """Hoisted one-time weight prep (call at model load, not per forward).

    wp: [H, Din]  project.weight   (PyTorch Linear convention [out, in])
    bp: [H]       project.bias
    w1: [H//r, H] gate_weight1.weight
    w2: [H, H//r] gate_weight2.weight
    """
    wv = wp[:, :vlad_size].T          # [Dv, H]  projection weight, video slice
    wt = wp[:, vlad_size:].T          # [Dt, H]  projection weight, text slice
    bp2 = bp.reshape(1, -1)           # [1, H]
    wg = (w2 @ w1).T                  # [H, H]   fused gate matrix: act @ W1^T @ W2^T == act @ (W2@W1)^T
    return wv, wt, bp2, wg


def segate_forward(x_video, x_text, params, *, block_b=128):
    """x_video: [B, Dv], x_text: [B, Dt]; params from prepare_params()."""
    wv, wt, bp2, wg = params
    B, Dv = x_video.shape
    Dt = x_text.shape[1]
    H = wv.shape[1]
    out_dtype = x_video.dtype

    # Row tile: at least one f32 sublane group (8), at most block_b (MXU-friendly 128).
    bb = int(min(block_b, _round_up(B, 8)))
    pad_b = int(_round_up(B, bb))
    if pad_b != B:
        x_video = jnp.pad(x_video, ((0, pad_b - B), (0, 0)))
        x_text = jnp.pad(x_text, ((0, pad_b - B), (0, 0)))

    grid = (pad_b // bb,)

    out = pl.pallas_call(
        segate_kernel,
        out_shape=jax.ShapeDtypeStruct((pad_b, H), out_dtype),
        grid=grid,
        in_specs=[
            # Streamed row tiles (double-buffered by the pipeline).
            pl.BlockSpec((bb, Dv), lambda i: (i, 0)),
            pl.BlockSpec((bb, Dt), lambda i: (i, 0)),
            # Weights / bias: same block every step -> DMA'd once, stay VMEM-resident.
            pl.BlockSpec((Dv, H), lambda i: (0, 0)),
            pl.BlockSpec((Dt, H), lambda i: (0, 0)),
            pl.BlockSpec((1, H), lambda i: (0, 0)),
            pl.BlockSpec((H, H), lambda i: (0, 0)),
        ],
        out_specs=pl.BlockSpec((bb, H), lambda i: (i, 0)),
        compiler_params=pltpu.CompilerParams(
            # Batch-row axis is independent -> megacore-shardable on v7x.
            dimension_semantics=("parallel",)),
    )(x_video, x_text, wv, wt, bp2, wg)

    return out[:B] if pad_b != B else out


if __name__ == "__main__":
    # Config mirroring SeGate.__init__ at small sizes:
    #   video: num_clusters=4, lamb=1.0, in_size=8, groups=2
    #     -> vlad_size = 4 * int(1.0 * 8 // 2) = 16
    #   text:  in_size = 16
    #   h_size = 32, gate_reduce = 4  -> hidden reduced = 8
    B = 2
    vlad_size = 4 * int(1.0 * 8 // 2)   # 16
    text_size = 16
    Din = vlad_size + text_size         # 32
    H = 32
    R = 4
    Hr = H // R                         # 8

    key = jax.random.PRNGKey(0)
    k_xv, k_xt, k_wp, k_bp, k_w1, k_w2 = jax.random.split(key, 6)

    # Inputs (the two members of x_list)
    x_video = jax.random.normal(k_xv, (B, vlad_size), dtype=jnp.float32)
    x_text = jax.random.normal(k_xt, (B, text_size), dtype=jnp.float32)

    # Deterministic parameter init in PyTorch Linear convention ([out, in]).
    wp = jax.random.normal(k_wp, (H, Din), dtype=jnp.float32) * 0.05   # project.weight
    bp = jax.random.normal(k_bp, (H,), dtype=jnp.float32) * 0.05       # project.bias
    w1 = jax.random.normal(k_w1, (Hr, H), dtype=jnp.float32) * 0.05    # gate_weight1.weight
    w2 = jax.random.normal(k_w2, (H, Hr), dtype=jnp.float32) * 0.05    # gate_weight2.weight

    # One-time prep (model load), not per forward call.
    params = prepare_params(wp, bp, w1, w2, vlad_size)

    out = segate_forward(x_video, x_text, params)
    out = jax.block_until_ready(out)

    # Pure-JAX reference reproducing the PyTorch eval-mode forward exactly
    # (concat + two separate gate matmuls).
    concat = jnp.concatenate([x_video, x_text], axis=-1)
    act_ref = concat @ wp.T + bp
    gate_ref = jax.nn.sigmoid((act_ref @ w1.T) @ w2.T)
    ref = gate_ref * act_ref

    assert out.shape == (B, H)
    assert jnp.allclose(out, ref, atol=1e-5, rtol=1e-5)
    print("KERNEL_OK")
</pallas_src>

<mosaic_0001>
module attributes {stable_mosaic.version = 11 : i64} {
  func.func @segate_kernel(%arg0: i32, %arg1: memref<8x16xf32, #tpu.memory_space<vmem>>, %arg2: memref<8x16xf32, #tpu.memory_space<vmem>>, %arg3: memref<16x32xf32, #tpu.memory_space<vmem>>, %arg4: memref<16x32xf32, #tpu.memory_space<vmem>>, %arg5: memref<1x32xf32, #tpu.memory_space<vmem>>, %arg6: memref<32x32xf32, #tpu.memory_space<vmem>>, %arg7: memref<8x32xf32, #tpu.memory_space<vmem>>) attributes {dimension_semantics = [#tpu.dimension_semantics<parallel>], iteration_bounds = array<i64: 1>, scalar_prefetch = 0 : i64, scratch_operands = 0 : i64, tpu.core_type = #tpu.core_type<tc>, window_params = [{transform_indices = @transform_0, window_bounds = array<i64: 8, 16>}, {transform_indices = @transform_1, window_bounds = array<i64: 8, 16>}, {pipeline_mode = #tpu.pipeline_mode<synchronous>, transform_indices = @transform_2, window_bounds = array<i64: 16, 32>}, {pipeline_mode = #tpu.pipeline_mode<synchronous>, transform_indices = @transform_3, window_bounds = array<i64: 16, 32>}, {pipeline_mode = #tpu.pipeline_mode<synchronous>, transform_indices = @transform_4, window_bounds = array<i64: 1, 32>}, {pipeline_mode = #tpu.pipeline_mode<synchronous>, transform_indices = @transform_5, window_bounds = array<i64: 32, 32>}, {transform_indices = @transform_6, window_bounds = array<i64: 8, 32>}]} {
    %c0 = arith.constant 0 : index
    %c0_0 = arith.constant 0 : index
    %0 = vector.load %arg1[%c0, %c0_0] : memref<8x16xf32, #tpu.memory_space<vmem>>, vector<8x16xf32>
    %c0_1 = arith.constant 0 : index
    %c0_2 = arith.constant 0 : index
    %1 = vector.load %arg3[%c0_1, %c0_2] : memref<16x32xf32, #tpu.memory_space<vmem>>, vector<16x32xf32>
    %cst = arith.constant dense<0.000000e+00> : vector<8x32xf32>
    %2 = tpu.matmul %0, %1, %cst {dimension_numbers = #tpu.dot_dimension_numbers<[1], [0], [0], [1], [0, 0, 1, 1], [], []>} : vector<8x16xf32>, vector<16x32xf32>, vector<8x32xf32> -> vector<8x32xf32>
    %c0_3 = arith.constant 0 : index
    %c0_4 = arith.constant 0 : index
    %3 = vector.load %arg2[%c0_3, %c0_4] : memref<8x16xf32, #tpu.memory_space<vmem>>, vector<8x16xf32>
    %c0_5 = arith.constant 0 : index
    %c0_6 = arith.constant 0 : index
    %4 = vector.load %arg4[%c0_5, %c0_6] : memref<16x32xf32, #tpu.memory_space<vmem>>, vector<16x32xf32>
    %cst_7 = arith.constant dense<0.000000e+00> : vector<8x32xf32>
    %5 = tpu.matmul %3, %4, %cst_7 {dimension_numbers = #tpu.dot_dimension_numbers<[1], [0], [0], [1], [0, 0, 1, 1], [], []>} : vector<8x16xf32>, vector<16x32xf32>, vector<8x32xf32> -> vector<8x32xf32>
    %6 = arith.addf %2, %5 : vector<8x32xf32>
    %c0_8 = arith.constant 0 : index
    %c0_9 = arith.constant 0 : index
    %7 = vector.load %arg5[%c0_8, %c0_9] : memref<1x32xf32, #tpu.memory_space<vmem>>, vector<1x32xf32>
    %8 = vector.broadcast %7 : vector<1x32xf32> to vector<8x32xf32>
    %9 = arith.addf %6, %8 : vector<8x32xf32>
    %c0_10 = arith.constant 0 : index
    %c0_11 = arith.constant 0 : index
    %10 = vector.load %arg6[%c0_10, %c0_11] : memref<32x32xf32, #tpu.memory_space<vmem>>, vector<32x32xf32>
    %cst_12 = arith.constant dense<0.000000e+00> : vector<8x32xf32>
    %11 = tpu.matmul %9, %10, %cst_12 {dimension_numbers = #tpu.dot_dimension_numbers<[1], [0], [0], [1], [0, 0, 1, 1], [], []>} : vector<8x32xf32>, vector<32x32xf32>, vector<8x32xf32> -> vector<8x32xf32>
    %12 = arith.negf %11 : vector<8x32xf32>
    %13 = math.exp %12 : vector<8x32xf32>
    %cst_13 = arith.constant 1.000000e+00 : f32
    %14 = vector.broadcast %cst_13 : f32 to vector<8x32xf32>
    %15 = arith.addf %14, %13 : vector<8x32xf32>
    %16 = arith.divf %14, %15 : vector<8x32xf32>
    %17 = arith.mulf %16, %9 : vector<8x32xf32>
    %c0_14 = arith.constant 0 : index
    %c0_15 = arith.constant 0 : index
    %18 = vector.load %arg7[%c0_14, %c0_15] : memref<8x32xf32, #tpu.memory_space<vmem>>, vector<8x32xf32>
    tpu.vector_store %arg7[%c0_14, %c0_15], %17 {strides = array<i32>} : memref<8x32xf32, #tpu.memory_space<vmem>>, vector<8x32xf32>,
    return
  }
  func.func @transform_0(%arg0: i32) -> (i32, i32) {
    %c0_i32 = arith.constant 0 : i32
    %c0_i32_0 = arith.constant 0 : i32
    return %arg0, %c0_i32 : i32, i32
  }
  func.func @transform_1(%arg0: i32) -> (i32, i32) {
    %c0_i32 = arith.constant 0 : i32
    %c0_i32_0 = arith.constant 0 : i32
    return %arg0, %c0_i32 : i32, i32
  }
  func.func @transform_2(%arg0: i32) -> (i32, i32) {
    %c0_i32 = arith.constant 0 : i32
    %c0_i32_0 = arith.constant 0 : i32
    %c0_i32_1 = arith.constant 0 : i32
    return %c0_i32, %c0_i32_0 : i32, i32
  }
  func.func @transform_3(%arg0: i32) -> (i32, i32) {
    %c0_i32 = arith.constant 0 : i32
    %c0_i32_0 = arith.constant 0 : i32
    %c0_i32_1 = arith.constant 0 : i32
    return %c0_i32, %c0_i32_0 : i32, i32
  }
  func.func @transform_4(%arg0: i32) -> (i32, i32) {
    %c0_i32 = arith.constant 0 : i32
    %c0_i32_0 = arith.constant 0 : i32
    %c0_i32_1 = arith.constant 0 : i32
    return %c0_i32, %c0_i32_0 : i32, i32
  }
  func.func @transform_5(%arg0: i32) -> (i32, i32) {
    %c0_i32 = arith.constant 0 : i32
    %c0_i32_0 = arith.constant 0 : i32
    %c0_i32_1 = arith.constant 0 : i32
    return %c0_i32, %c0_i32_0 : i32, i32
  }
  func.func @transform_6(%arg0: i32) -> (i32, i32) {
    %c0_i32 = arith.constant 0 : i32
    %c0_i32_0 = arith.constant 0 : i32
    return %arg0, %c0_i32 : i32, i32
  }
}

</mosaic_0001>

<bundles_post_ra>
// kernel: tpu_custom_call.1
= control target key start
LH: loop header
LB: loop body
LE: loop exit
PB: predicated region body
PF: predicated region fallthrough
CT: control target
= control target key end

     0   :  { %11 = vsyncpa [#allocation3], 0  ;;  %s693_s0 = inlined_call_operand.hbm [shape: f32[8,16], index: 0, kind: input, shape index: {}]   ;;  %s694_s1 = inlined_call_operand.hbm [shape: f32[8,16], index: 1, kind: input, shape index: {}]   ;;  %s695_s2 = inlined_call_operand.hbm [shape: f32[16,32], index: 2, kind: input, shape index: {}]   ;;  %s696_s3 = inlined_call_operand.hbm [shape: f32[16,32], index: 3, kind: input, shape index: {}]   ;;  %s697_s4 = inlined_call_operand.vmem [shape: f32[1,32], index: 4, kind: input, shape index: {}]   ;;  %s698_s5 = inlined_call_operand.hbm [shape: f32[32,32], index: 5, kind: input, shape index: {}]   ;;  %s699_s6 = inlined_call_operand.hbm [shape: f32[8,32], index: 6, kind: output, shape index: {}]  }
   0x1   :  { %12 = vsyncpa [#allocation6], 0 }
   0x2   :  { %13 = vsyncpa [#allocation9], 0 }
   0x3   :  { %14 = vsyncpa [#allocation4], 0  ;;  %s560_s21 = smov [#allocation5]   ;;  %s420_s25 = scalar_lea.hbm %s694_s1, 128 }
   0x4   :  { %s31_s22 = sshll.u32 %s560_s21, 4  ;;  %p421_p0 = scmp.ne.s32.totalorder %s694_s1, %s420_s25  ;;  %s32_s22 = int_to_ptr.vmem [resolvable:$true] %s31_s22 }
   0x5   :  { %p424_p1 = scmp.lt.u32.totalorder %s420_s25, %s694_s1 }
   0x7   :  { %p426_p2 = pnand %p424_p1, %p421_p0 }
   0x9   :  { %429 = shalt.err (!%p426_p2)
}
   0xa   :  { %s430_s30 = scalar_lea.vmem %s32_s22, 128  ;;  %p435_p4 = scmp.lt.s32.totalorder %s32_s22, %s32_s22 }
   0xb   :  { %p431_p3 = scmp.ne.s32.totalorder %s32_s22, %s430_s30  ;;  %p436_p5 = scmp.lt.s32.totalorder %s430_s30, %s430_s30 }
   0xd   :  { %p437_p6 = por %p436_p5, %p435_p4 }
   0xf   :  { %p438_p7 = pnand %p437_p6, %p431_p3 }
  0x11   :  { %441 = shalt.err (!%p438_p7)
}
  0x12   :  { %34 = dma.hbm_to_vmem [thread:$0]  %s694_s1, 128, %s32_s22, [#allocation6]  }
  0x13   :  { %s561_s9 = smov [#allocation8]   ;;  %s562_s11 = smov [#allocation2]  }
  0x14   :  { %s52_s10 = sshll.u32 %s561_s9, 4  ;;  %s21_s12 = sshll.u32 %s562_s11, 4  ;;  %s53_s10 = int_to_ptr.vmem [resolvable:$true] %s52_s10  ;;  %s22_s12 = int_to_ptr.vmem [resolvable:$true] %s21_s12 }
  0x15   :  { %s442_s15 = scalar_lea.hbm %s696_s3, 256 }
  0x16   :  { %p443_p8 = scmp.ne.s32.totalorder %s696_s3, %s442_s15  ;;  %p446_p9 = scmp.lt.u32.totalorder %s442_s15, %s696_s3 }
  0x18   :  { %p448_p10 = pnand %p446_p9, %p443_p8 }
  0x1a   :  { %451 = shalt.err (!%p448_p10)
}
  0x1b   :  { %s452_s1 = scalar_lea.vmem %s53_s10, 256  ;;  %p457_p12 = scmp.lt.s32.totalorder %s53_s10, %s53_s10 }
  0x1c   :  { %p453_p11 = scmp.ne.s32.totalorder %s53_s10, %s452_s1  ;;  %p458_p13 = scmp.lt.s32.totalorder %s452_s1, %s452_s1 }
  0x1e   :  { %p459_p0 = por %p458_p13, %p457_p12 }
  0x20   :  { %p460_p1 = pnand %p459_p0, %p453_p11 }
  0x22   :  { %463 = shalt.err (!%p460_p1)
}
  0x23   :  { %s563_s20 = smov 128   ;;  %s564_s21 = smov 8  }
  0x24   :  { %58 = dma.hbm_to_vmem [thread:$0]  %s696_s3, 256, %s53_s10, [#allocation9], %s563_s20, %s563_s20, %s564_s21  }
  0x25   :  { %s464_s26 = scalar_lea.hbm %s693_s0, 128 }
  0x26   :  { %p465_p2 = scmp.ne.s32.totalorder %s693_s0, %s464_s26  ;;  %p468_p3 = scmp.lt.u32.totalorder %s464_s26, %s693_s0 }
  0x28   :  { %p470_p4 = pnand %p468_p3, %p465_p2 }
  0x2a   :  { %473 = shalt.err (!%p470_p4)
}
  0x2b   :  { %s474_s7 = scalar_lea.vmem %s22_s12, 128  ;;  %p479_p6 = scmp.lt.s32.totalorder %s22_s12, %s22_s12 }
  0x2c   :  { %p475_p5 = scmp.ne.s32.totalorder %s22_s12, %s474_s7  ;;  %p480_p7 = scmp.lt.s32.totalorder %s474_s7, %s474_s7 }
  0x2e   :  { %p481_p8 = por %p480_p7, %p479_p6 }
  0x30   :  { %p482_p9 = pnand %p481_p8, %p475_p5 }
  0x32   :  { %485 = shalt.err (!%p482_p9)
}
  0x33   :  { %24 = dma.hbm_to_vmem [thread:$0]  %s693_s0, 128, %s22_s12, [#allocation3]  }
  0x34   :  { %s565_s9 = smov [#allocation7]   ;;  %s566_s11 = smov [#allocation10]  }
  0x35   :  { %s40_s10 = sshll.u32 %s565_s9, 4  ;;  %s66_s13 = sshll.u32 %s566_s11, 4  ;;  %s41_s10 = int_to_ptr.vmem [resolvable:$true] %s40_s10  ;;  %s67_s13 = int_to_ptr.vmem [resolvable:$true] %s66_s13 }
  0x36   :  { %s486_s16 = scalar_lea.hbm %s695_s2, 256 }
  0x37   :  { %p487_p10 = scmp.ne.s32.totalorder %s695_s2, %s486_s16  ;;  %p490_p11 = scmp.lt.u32.totalorder %s486_s16, %s695_s2 }
  0x39   :  { %p492_p12 = pnand %p490_p11, %p487_p10 }
  0x3b   :  { %495 = shalt.err (!%p492_p12)
}
  0x3c   :  { %s496_s0 = scalar_lea.vmem %s41_s10, 256  ;;  %p501_p0 = scmp.lt.s32.totalorder %s41_s10, %s41_s10 }
  0x3d   :  { %p497_p13 = scmp.ne.s32.totalorder %s41_s10, %s496_s0  ;;  %p502_p1 = scmp.lt.s32.totalorder %s496_s0, %s496_s0 }
  0x3f   :  { %p503_p2 = por %p502_p1, %p501_p0 }
  0x41   :  { %p504_p3 = pnand %p503_p2, %p497_p13 }
  0x43   :  { %507 = shalt.err (!%p504_p3)
}
  0x44   :  { %46 = dma.hbm_to_vmem [thread:$0]  %s695_s2, 256, %s41_s10, [#allocation6], %s563_s20, %s563_s20, %s564_s21  }
  0x45   :  { %s508_s25 = scalar_lea.hbm %s698_s5, 512 }
  0x46   :  { %p509_p4 = scmp.ne.s32.totalorder %s698_s5, %s508_s25  ;;  %p512_p5 = scmp.lt.u32.totalorder %s508_s25, %s698_s5 }
  0x48   :  { %p514_p6 = pnand %p512_p5, %p509_p4 }
  0x4a   :  { %517 = shalt.err (!%p514_p6)
}
  0x4b   :  { %s518_s30 = scalar_lea.vmem %s67_s13, 512  ;;  %p523_p8 = scmp.lt.s32.totalorder %s67_s13, %s67_s13 }
  0x4c   :  { %p519_p7 = scmp.ne.s32.totalorder %s67_s13, %s518_s30  ;;  %p524_p9 = scmp.lt.s32.totalorder %s518_s30, %s518_s30 }
  0x4e   :  { %p525_p10 = por %p524_p9, %p523_p8 }
  0x50   :  { %p526_p11 = pnand %p525_p10, %p519_p7 }
  0x52   :  { %529 = shalt.err (!%p526_p11)
}
  0x53   :  { %72 = dma.hbm_to_vmem [thread:$0]  %s698_s5, 512, %s67_s13, [#allocation9], %s563_s20, %s563_s20, %s564_s21  }
  0x54   :  { %552 = dma.done.wait [#allocation3], 128  }
  0x55   :  { %553 = vsyncadd [#allocation3], 4294967168 }
  0x56   :  { %554 = dma.done.wait [#allocation6], 384  }
  0x57   :  { %555 = vsyncadd [#allocation6], 4294966912 }
  0x58   :  { %556 = dma.done.wait [#allocation9], 768  }
  0x59   :  { %557 = vsyncadd [#allocation9], 4294966528  ;;  %v567_v0 = vmov 0.0|0.0   ;;  %vm568_vm0 = vmmov 0   ;;  %v569_v1 = vmov 0.0   ;;  %v92_v2 = vld [vmem:[#allocation8] sm:$0xff] }
  0x5a   :  { %393 = vmatprep.subr.bf16.mxu1 %v567_v0  ;;  %372 = vmatprep.mubr.msk.f32.mxu1 %vm568_vm0, %v569_v1  ;;  %v93_v3 = vld [vmem:[#allocation8 + $0x8] sm:$0xff]  ;;  %v89_v5 = vld [vmem:[#allocation7] sm:$0xff]  ;;  %v90_v6 = vld [vmem:[#allocation7 + $0x8] sm:$0xff]  ;;  %vm94_vm1 = vcmask 130048   ;;  %vm253_vm2 = vcmask 261120   ;;  %s570_s21 = smov [#allocation11]  }
  0x5b   :  { %399 = vmatprep.subr.bf16.mxu0 %v567_v0  ;;  %390 = vmatprep.mubr.msk.f32.mxu0 %vm568_vm0, %v569_v1  ;;  %v394_v4 = vpack.c.bf16 %v93_v3, %v92_v2  ;;  %v91_v7 = vld [vmem:[#allocation5] sm:$0xff]  ;;  %v397_v8 = vpack.c.bf16 %v90_v6, %v89_v5  ;;  %v88_v9 = vld [vmem:[#allocation2] sm:$0xff]  ;;  %v249_v10 = vld [vmem:[#allocation10] sm:$0xff]  ;;  %s341_s3 = sshll.u32 %s570_s21, 4  ;;  %s342_s3 = int_to_ptr.vmem [resolvable:$true] %s341_s3 }
  0x5c   :  { %v250_v11 = vld [vmem:[#allocation10 + $0x8] sm:$0xff]  ;;  %v251_v13 = vld [vmem:[#allocation10 + $0x10] sm:$0xff]  ;;  %v252_v14 = vld [vmem:[#allocation10 + $0x18] sm:$0xff]  ;;  %s530_s8 = scalar_lea.vmem %s342_s3, 128  ;;  %p535_p13 = scmp.lt.s32.totalorder %s342_s3, %s342_s3 }
  0x5d   :  { %395 = vmatpush3.bf16.msra.mxu1 %v394_v4  ;;  %v400_v12 = vpack.c.bf16 %v250_v11, %v249_v10  ;;  %v403_v15 = vpack.c.bf16 %v252_v14, %v251_v13  ;;  %v354_v19 = vld [vmem:[%s697_s4] ss:$0 sm:$0xff]  ;;  %p531_p12 = scmp.ne.s32.totalorder %s342_s3, %s530_s8  ;;  %p536_p0 = scmp.lt.s32.totalorder %s530_s8, %s530_s8 }
  0x5e   :  { %396 = vmatprep.subr.bf16.mxu1 %v567_v0 }
  0x5f   :  { %401 = vmatpush3.bf16.msra.mxu0 %v400_v12  ;;  %p537_p1 = por %p536_p0, %p535_p13 }
  0x60   :  { %373 = vmatmul.mubr.msk.f32.vlgmr.msra.gmra.mrb[0].mxu1 %vm94_vm1, %v91_v7  ;;  %402 = vmatprep.subr.bf16.mxu0 %v567_v0 }
  0x61   :  { %398 = vmatpush3.bf16.msra.mxu1 %v397_v8  ;;  %379 = vmatprep.mubr.msk.f32.mxu1 %vm568_vm0, %v569_v1  ;;  %p538_p2 = pnand %p537_p1, %p531_p12 }
  0x63   :  { %404 = vmatpush3.bf16.msra.mxu0 %v403_v15 }
  0x64   :  { %380 = vmatmul.mubr.msk.f32.vlgmr.msra.gmra.mrb[2].mxu1 %vm94_vm1, %v88_v9 }
 0x133   :  { %v164_v16 = vpop.f32.mrb[0].mxu1 }
 0x134   :  { %v374_v17 = vpop.f32.mrb[1].mxu1 }
 0x137   :  { %v237_v18 = vpop.f32.mrb[2].mxu1 }
 0x138   :  { %v238_v20 = vadd.f32 %v237_v18, %v164_v16  ;;  %v381_v21 = vpop.f32.mrb[3].mxu1 }
 0x13a   :  { %v248_v22 = vadd.f32 %v354_v19, %v238_v20 }
 0x13c   :  { %391 = vmatmul.mubr.msk.f32.vlgmr.msra.gmra.mrb[0].mxu0 %vm253_vm2, %v248_v22 }
 0x20f   :  { %v323_v23 = vpop.f32.mrb[0].mxu0 }
 0x210   :  { %v356_v24 = vmul.f32 -1.442695, %v323_v23  ;;  %v392_v25 = vpop.f32.mrb[1].mxu0 }
 0x212   :  { %416 = vpow2.f32 %v356_v24 }
 0x21c   :  { %v417_v26 = vpop.eup %416 }
 0x21d   :  { %v330_v27 = vadd.f32 1.0, %v417_v26 }
 0x21f   :  { %418 = vrcp.f32 %v330_v27 }
 0x229   :  { %v419_v28 = vpop.eup %418 }
 0x22a   :  { %v333_v29 = vmul.f32 %v419_v28, %v248_v22 }
 0x22c   :  { %334 = vst.msk [vmem:[#allocation11] sm:$0xff] %vm253_vm2, %v333_v29 }
 0x22d   :  { %541 = shalt.err (!%p538_p2)
}
 0x22e   :  { %s542_s10 = scalar_lea.hbm %s699_s6, 128 }
 0x22f   :  { %p543_p3 = scmp.ne.s32.totalorder %s699_s6, %s542_s10  ;;  %p546_p4 = scmp.lt.u32.totalorder %s542_s10, %s699_s6 }
 0x231   :  { %p548_p5 = pnand %p546_p4, %p543_p3 }
 0x233   :  { %551 = shalt.err (!%p548_p5)
}
 0x234   :  { %344 = dma.vmem_to_hbm [thread:$0]  %s342_s3, 128, %s699_s6, [#allocation4]  }
 0x235   :  { %558 = dma.done.wait [#allocation4], 128  }
 0x236   :  { %559 = vsyncadd [#allocation4], 4294967168 }
 0x237   :  { %348 = vsyncpa [#allocation3], 1 }
 0x238   :  { %349 = vsyncpa [#allocation6], 1 }
 0x239   :  { %350 = vsyncpa [#allocation9], 1 }
 0x23a   :  { %351 = vsyncpa [#allocation4], 1 }

</bundles_post_ra>
